<compile_context>
chip_gen: v5e
topology: v5e:2x2
jax: 0.10.0
libtpu: 0.0.40
codegen_flags: <defaults>
</compile_context>

<pallas_src>
import functools

import jax
import jax.numpy as jnp
from jax import lax
from jax.experimental import pallas as pl
from jax.experimental.pallas import tpu as pltpu


LANE = 128      # TPU lane width (last-dim tiling unit)
SUBLANE = 8     # f32 sublane count (second-to-last-dim tiling unit)


def _round_up(x, m):
    return ((x + m - 1) // m) * m


def _fused_forward_kernel(ids_ref, table_ref, b_ref, o_ref, *, apply_exp):
    """One grid step: TILE_B rows -> lane-dense [TILE_B, C_pad] output.

    ids_ref   : [tb, 2]     int32   (col 0 = home id, col 1 = away id)
    table_ref : [2T, C_pad] bf16    (rows 0..T-1 = emb@W_h, rows T..2T-1 = emb@W_a)
    b_ref     : [1, C_pad]  f32     (padded class lanes pre-filled with -1e30)
    """
    tile_b = ids_ref.shape[0]
    two_t = table_ref.shape[0]
    num_teams = two_t // 2

    ids = ids_ref[...]                                     # [tb, 2] int32
    hid = ids[:, 0:1]                                      # [tb, 1]
    aid = ids[:, 1:2] + num_teams                          # offset into away half

    # Combined one-hot gather+head: one bf16 MXU matmul [tb,2T]@[2T,C_pad].
    col = lax.broadcasted_iota(jnp.int32, (tile_b, two_t), 1)
    onehot = ((col == hid) | (col == aid)).astype(jnp.bfloat16)
    logits = jnp.dot(onehot, table_ref[...],
                     preferred_element_type=jnp.float32) + b_ref[...]

    # Padded class lanes already sit at -1e30 via the bias -> no mask needed.
    # Numerically stable log_softmax epilogue (VPU / EUP / XLU).
    m = jnp.max(logits, axis=-1, keepdims=True)
    shifted = logits - m
    e = jnp.exp(shifted)
    sumexp = jnp.sum(e, axis=-1, keepdims=True)
    if apply_exp:
        out = e * pl.reciprocal(sumexp, approx=True)       # probabilities
    else:
        out = shifted - jnp.log(sumexp)                    # log-probabilities
    o_ref[...] = out.astype(o_ref.dtype)


@functools.partial(jax.jit, static_argnames=("num_classes", "apply_exp", "tile_b"))
def fused_embed_head(home_ids, away_ids, table_pad, b_pad, *,
                     num_classes, apply_exp=False, tile_b=1024):
    """Fused (embedding @ head) one-hot gather + (log_)softmax.

    home_ids/away_ids: [B] int; table_pad: [2T, C_pad] bf16;
    b_pad: [1, C_pad] f32 (padded lanes = -1e30).
    Returns [B, num_classes] f32.
    """
    B = int(home_ids.shape[0])
    two_t, c_pad = table_pad.shape

    # Batch tile: multiple of 8 sublanes.  Tiny B -> single grid step; larger
    # B -> at least 2 steps (capped at tile_b rows) so "parallel" semantics
    # can shard the batch across v7x's two TensorCores.
    if B <= 2 * SUBLANE:
        tb = _round_up(max(B, 1), SUBLANE)
    else:
        tb = min(tile_b, _round_up((B + 1) // 2, SUBLANE))
    b_rows = _round_up(B, tb)
    grid = (b_rows // tb,)

    # Pack both id streams into one [b_rows, 2] int32 input (padded rows use
    # team 0 and are sliced away below).
    ids = jnp.stack([home_ids.astype(jnp.int32),
                     away_ids.astype(jnp.int32)], axis=-1)        # [B, 2]
    if b_rows > B:
        ids = jnp.pad(ids, ((0, b_rows - B), (0, 0)))

    kernel = functools.partial(_fused_forward_kernel, apply_exp=apply_exp)

    out = pl.pallas_call(
        kernel,
        out_shape=jax.ShapeDtypeStruct((b_rows, c_pad), jnp.float32),
        grid=grid,
        in_specs=[
            pl.BlockSpec((tb, 2), lambda i: (i, 0)),           # packed ids
            pl.BlockSpec((two_t, c_pad), lambda i: (0, 0)),    # fused table (bf16)
            pl.BlockSpec((1, c_pad), lambda i: (0, 0)),        # bias (+mask)
        ],
        out_specs=pl.BlockSpec((tb, c_pad), lambda i: (i, 0)),
        compiler_params=pltpu.CompilerParams(
            dimension_semantics=("parallel",)),                # batch over TCs
    )(ids, table_pad, b_pad)

    return out[:B, :num_classes]


class SportsPredictionModel:
    """JAX/Pallas analogue of a concrete TorchModule subclass."""

    def __init__(self, num_teams=16, emb_dim=32, num_classes=3, key=None):
        if key is None:
            key = jax.random.PRNGKey(0)
        k_emb, k_w, k_b = jax.random.split(key, 3)

        self.num_classes = num_classes
        self.c_pad = _round_up(num_classes, LANE)   # lane-dense class axis

        # Deterministic synthetic parameter init (no checkpoint loading).
        self.embedding = jax.random.normal(
            k_emb, (num_teams, emb_dim), dtype=jnp.float32) * 0.1
        self.w = jax.random.normal(
            k_w, (2 * emb_dim, num_classes), dtype=jnp.float32) * 0.1
        self.b = jax.random.normal(
            k_b, (1, num_classes), dtype=jnp.float32) * 0.01

        # Fold embedding into the head offline:
        #   logits = emb[hid] @ W[:E] + emb[aid] @ W[E:] + b
        #          = table_h[hid] + table_a[aid] + b
        table_h = self.embedding @ self.w[:emb_dim]                 # [T, C]
        table_a = self.embedding @ self.w[emb_dim:]                 # [T, C]
        table = jnp.concatenate([table_h, table_a], axis=0)         # [2T, C]
        self.table_pad = jnp.zeros((2 * num_teams, self.c_pad), jnp.bfloat16
                                   ).at[:, :num_classes].set(table.astype(jnp.bfloat16))
        # Class-padding mask baked into the bias: padded lanes = -1e30.
        self.b_pad = jnp.full((1, self.c_pad), -1e30, jnp.float32
                              ).at[:, :num_classes].set(self.b)

        # Mirrors TorchModule.__init__ defaults (training loop not ported).
        self.batch_size = 9
        self.epochs = 100
        self.lr = 0.0001
        # TODO(synk): fit()/Adam/NLLLoss training loop and the pandas-based
        # get_features_batch/get_labels_batch/model_specific_computation hooks
        # are host-side logic with no Pallas equivalent; only the
        # forward/predict hot path is ported.

    def forward(self, matches, home_ids, away_ids):
        # Entire hot path (one-hot gather of the fused table + log_softmax)
        # in one jit-ed Pallas program; returns [B, C] log-probabilities.
        return fused_embed_head(home_ids, away_ids, self.table_pad, self.b_pad,
                                num_classes=self.num_classes, apply_exp=False)

    def predict(self, matches, home_ids, away_ids):
        # TorchModule.predict: exp(log-probs) -> probabilities, fused in-kernel.
        return fused_embed_head(home_ids, away_ids, self.table_pad, self.b_pad,
                                num_classes=self.num_classes, apply_exp=True)


if __name__ == "__main__":
    key = jax.random.PRNGKey(0)
    k_model, k_home, k_away = jax.random.split(key, 3)

    B, NUM_TEAMS, EMB_DIM, NUM_CLASSES = 8, 16, 32, 3
    model = SportsPredictionModel(num_teams=NUM_TEAMS, emb_dim=EMB_DIM,
                                  num_classes=NUM_CLASSES, key=k_model)

    home = jax.random.randint(k_home, (B,), 0, NUM_TEAMS, dtype=jnp.int32)
    away = jax.random.randint(k_away, (B,), 0, NUM_TEAMS, dtype=jnp.int32)

    log_probs = model.forward(None, home, away)
    jax.block_until_ready(log_probs)

    probs = model.predict(None, home, away)
    jax.block_until_ready(probs)

    # Pure-JAX f32 reference of the same forward
    # (gather + concat + linear + log_softmax).
    h = jnp.take(model.embedding, home, axis=0)
    a = jnp.take(model.embedding, away, axis=0)
    x = jnp.concatenate([h, a], axis=-1)
    ref_log_probs = jax.nn.log_softmax(x @ model.w + model.b, axis=-1)

    assert log_probs.shape == (B, NUM_CLASSES)
    assert probs.shape == (B, NUM_CLASSES)
    assert bool(jnp.allclose(jnp.sum(probs, axis=-1), 1.0, atol=5e-3))
    assert bool(jnp.allclose(probs, jnp.exp(log_probs), atol=5e-3))
    assert bool(jnp.allclose(log_probs, ref_log_probs, atol=1e-2, rtol=1e-2))
    assert bool(jnp.allclose(probs, jnp.exp(ref_log_probs), atol=1e-2, rtol=1e-2))

    print("KERNEL_OK")
</pallas_src>

<mosaic_0001>
module attributes {stable_mosaic.version = 11 : i64} {
  func.func @_fused_forward_kernel(%arg0: i32, %arg1: memref<8x2xi32, #tpu.memory_space<vmem>>, %arg2: memref<32x128xbf16, #tpu.memory_space<vmem>>, %arg3: memref<1x128xf32, #tpu.memory_space<vmem>>, %arg4: memref<8x128xf32, #tpu.memory_space<vmem>>) attributes {dimension_semantics = [#tpu.dimension_semantics<parallel>], iteration_bounds = array<i64: 1>, scalar_prefetch = 0 : i64, scratch_operands = 0 : i64, tpu.core_type = #tpu.core_type<tc>, window_params = [{transform_indices = @transform_0, window_bounds = array<i64: 8, 2>}, {pipeline_mode = #tpu.pipeline_mode<synchronous>, transform_indices = @transform_1, window_bounds = array<i64: 32, 128>}, {pipeline_mode = #tpu.pipeline_mode<synchronous>, transform_indices = @transform_2, window_bounds = array<i64: 1, 128>}, {transform_indices = @transform_3, window_bounds = array<i64: 8, 128>}]} {
    %c0 = arith.constant 0 : index
    %c0_0 = arith.constant 0 : index
    %0 = vector.load %arg1[%c0, %c0_0] : memref<8x2xi32, #tpu.memory_space<vmem>>, vector<8x2xi32>
    %1 = vector.extract_strided_slice %0 {offsets = [0, 0], sizes = [8, 1], strides = [1, 1]} : vector<8x2xi32> to vector<8x1xi32>
    %2 = vector.extract_strided_slice %0 {offsets = [0, 1], sizes = [8, 1], strides = [1, 1]} : vector<8x2xi32> to vector<8x1xi32>
    %c16_i32 = arith.constant 16 : i32
    %3 = vector.broadcast %c16_i32 : i32 to vector<8x1xi32>
    %4 = arith.addi %2, %3 : vector<8x1xi32>
    %5 = tpu.iota {dimensions = array<i32: 1>} : vector<8x32xi32>
    %6 = vector.broadcast %1 : vector<8x1xi32> to vector<8x32xi32>
    %7 = arith.cmpi eq, %5, %6 : vector<8x32xi32>
    %8 = vector.broadcast %4 : vector<8x1xi32> to vector<8x32xi32>
    %9 = arith.cmpi eq, %5, %8 : vector<8x32xi32>
    %10 = arith.ori %7, %9 : vector<8x32xi1>
    %11 = arith.extui %10 : vector<8x32xi1> to vector<8x32xi32>
    %12 = arith.sitofp %11 : vector<8x32xi32> to vector<8x32xf32>
    %13 = arith.truncf %12 : vector<8x32xf32> to vector<8x32xbf16>
    %c0_1 = arith.constant 0 : index
    %c0_2 = arith.constant 0 : index
    %14 = vector.load %arg2[%c0_1, %c0_2] : memref<32x128xbf16, #tpu.memory_space<vmem>>, vector<32x128xbf16>
    %cst = arith.constant dense<0.000000e+00> : vector<8x128xf32>
    %15 = tpu.matmul %13, %14, %cst {dimension_numbers = #tpu.dot_dimension_numbers<[1], [0], [0], [1], [0, 0, 1, 1], [], []>} : vector<8x32xbf16>, vector<32x128xbf16>, vector<8x128xf32> -> vector<8x128xf32>
    %c0_3 = arith.constant 0 : index
    %c0_4 = arith.constant 0 : index
    %16 = vector.load %arg3[%c0_3, %c0_4] : memref<1x128xf32, #tpu.memory_space<vmem>>, vector<1x128xf32>
    %17 = vector.broadcast %16 : vector<1x128xf32> to vector<8x128xf32>
    %18 = arith.addf %15, %17 : vector<8x128xf32>
    %cst_5 = arith.constant dense<0xFF800000> : vector<8xf32>
    %19 = vector.multi_reduction <maximumf>, %18, %cst_5 [1] : vector<8x128xf32> to vector<8xf32>
    %20 = vector.shape_cast %19 : vector<8xf32> to vector<8x1xf32>
    %21 = vector.broadcast %20 : vector<8x1xf32> to vector<8x128xf32>
    %22 = arith.subf %18, %21 : vector<8x128xf32>
    %23 = math.exp %22 : vector<8x128xf32>
    %cst_6 = arith.constant dense<0.000000e+00> : vector<8xf32>
    %24 = vector.multi_reduction <add>, %23, %cst_6 [1] : vector<8x128xf32> to vector<8xf32>
    %25 = vector.shape_cast %24 : vector<8xf32> to vector<8x1xf32>
    %26 = math.log %25 : vector<8x1xf32>
    %27 = vector.broadcast %26 : vector<8x1xf32> to vector<8x128xf32>
    %28 = arith.subf %22, %27 : vector<8x128xf32>
    %c0_7 = arith.constant 0 : index
    %c0_8 = arith.constant 0 : index
    %29 = vector.load %arg4[%c0_7, %c0_8] : memref<8x128xf32, #tpu.memory_space<vmem>>, vector<8x128xf32>
    tpu.vector_store %arg4[%c0_7, %c0_8], %28 {strides = array<i32>} : memref<8x128xf32, #tpu.memory_space<vmem>>, vector<8x128xf32>,
    return
  }
  func.func @transform_0(%arg0: i32) -> (i32, i32) {
    %c0_i32 = arith.constant 0 : i32
    %c0_i32_0 = arith.constant 0 : i32
    return %arg0, %c0_i32 : i32, i32
  }
  func.func @transform_1(%arg0: i32) -> (i32, i32) {
    %c0_i32 = arith.constant 0 : i32
    %c0_i32_0 = arith.constant 0 : i32
    %c0_i32_1 = arith.constant 0 : i32
    return %c0_i32, %c0_i32_0 : i32, i32
  }
  func.func @transform_2(%arg0: i32) -> (i32, i32) {
    %c0_i32 = arith.constant 0 : i32
    %c0_i32_0 = arith.constant 0 : i32
    %c0_i32_1 = arith.constant 0 : i32
    return %c0_i32, %c0_i32_0 : i32, i32
  }
  func.func @transform_3(%arg0: i32) -> (i32, i32) {
    %c0_i32 = arith.constant 0 : i32
    %c0_i32_0 = arith.constant 0 : i32
    return %arg0, %c0_i32 : i32, i32
  }
}

</mosaic_0001>

<bundles_post_ra>
// kernel: fused_embed_head.1
= control target key start
LH: loop header
LB: loop body
LE: loop exit
PB: predicated region body
PF: predicated region fallthrough
CT: control target
= control target key end

     0   :  { %8 = vsyncpa [#allocation3], 0  ;;  %s151_s15 = smov [#allocation2]   ;;  %s152_s17 = smov 64   ;;  %s189_s0 = inlined_call_operand.vmem [shape: s32[8,2], index: 0, kind: input, shape index: {}]   ;;  %s190_s1 = inlined_call_operand.hbm [shape: bf16[32,128], index: 1, kind: input, shape index: {}]   ;;  %s191_s2 = inlined_call_operand.vmem [shape: f32[1,128], index: 2, kind: input, shape index: {}]   ;;  %s192_s3 = inlined_call_operand.vmem [shape: f32[8,128], index: 3, kind: output, shape index: {}]  }
   0x1   :  { %s15_s14 = sshll.u32 %s190_s1, 4  ;;  %s17_s16 = sshll.u32 %s151_s15, 4  ;;  %s16_s14 = int_to_ptr.hbm [resolvable:$true] %s15_s14  ;;  %s18_s16 = int_to_ptr.vmem [resolvable:$true] %s17_s16 }
   0x2   :  { %s153_s18 = smov 4  }
   0x3   :  { %23 = dma.hbm_to_vmem [thread:$0]  %s16_s14, 256, %s18_s16, [#allocation3], %s152_s17, %s152_s17, %s153_s18  }
   0x4   :  { %149 = dma.done.wait [#allocation3], 256  }
   0x5   :  { %150 = vsyncadd [#allocation3], 4294967040  ;;  %v154_v0 = vmov 0   ;;  %v31_v1 = vld [vmem:[%s189_s0] sm:$0xff]  ;;  %v155_v3 = vmov 1   ;;  %v111_v4 = vld [vmem:[#allocation2 + $0x8] sm:$0xff]  ;;  %v33_v7 = vlaneseq }
   0x6   :  { %118 = vset.pattern.permute.xlu0 %v154_v0  ;;  %v32_v2 = vadd.s32 16, %v31_v1  ;;  %77 = vmatpush.bf16.msra.mxu0 %v111_v4  ;;  %v110_v5 = vld [vmem:[#allocation2] sm:$0xff]  ;;  %v156_v10 = vmov 0.0   ;;  %vm67_vm3 = vcmask 261120  }
   0x7   :  { %36 = vperm.xlu0 %118, %v31_v1   ;;  %v34_v8 = vand.u32 127, %v33_v7  ;;  %v120_v13 = vld [vmem:[%s191_s2] ss:$0 sm:$0xff] }
   0xa   :  { %78 = vmatpush.bf16.msra.mxu0 %v110_v5 }
   0xf   :  { %119 = vset.pattern.permute.xlu0 %v155_v3 }
  0x10   :  { %40 = vperm.xlu0 %119, %v32_v2  }
  0x79   :  { %v37_v6 = vpop.permute.xlu0 %36 }
  0x7a   :  { %vm38_vm0 = vcmp.eq.s32.totalorder %v34_v8, %v37_v6 }
  0x82   :  { %v41_v9 = vpop.permute.xlu0 %40 }
  0x83   :  { %vm42_vm1 = vcmp.eq.s32.totalorder %v34_v8, %v41_v9 }
  0x84   :  { %vm43_vm2 = vmor %vm38_vm0, %vm42_vm1 }
  0x85   :  { %v100_v11 = vsel %vm43_vm2, 1.0, %v156_v10 }
  0x86   :  { %v46_v12 = vpack.c.bf16 %v100_v11, %v100_v11 }
  0x88   :  { %109 = vmatmul.msk.bf16.vlgmr.msra.gmra.mxu0 %vm67_vm3, %v46_v12 }
 0x105   :  { %v80_v14 = vpop.f32.mrf.mxu0 }
 0x106   :  { %v81_v15 = vadd.f32 %v120_v13, %v80_v14 }
 0x108   :  { %84 = vmax.xlane.f32.xlu1 %v81_v15 }
 0x10d   :  { %v82_v16 = vpop.f32.mrf.mxu0 }
 0x17b   :  { %v85_v17 = vpop.xlane.xlu1 %84 }
 0x17c   :  { %v86_v18 = vsub.f32 %v81_v15, %v85_v17 }
 0x17e   :  { %v87_v19 = vmul.f32 1.442695, %v86_v18 }
 0x180   :  { %121 = vpow2.f32 %v87_v19 }
 0x186   :  { %v122_v20 = vpop.eup %121 }
 0x187   :  { %89 = vadd.xlane.f32.xlu1 %v122_v20 }
 0x1fa   :  { %v90_v21 = vpop.xlane.xlu1 %89 }
 0x1fb   :  { %123 = vlog2.f32 %v90_v21 }
 0x201   :  { %v124_v22 = vpop.eup %123 }
 0x202   :  { %v92_v23 = vmul.f32 0.6931472, %v124_v22 }
 0x204   :  { %v93_v24 = vsub.f32 %v86_v18, %v92_v23 }
 0x206   :  { %94 = vst [vmem:[%s192_s3] sm:$0xff] %v93_v24 }
 0x207   :  { %99 = vsyncpa [#allocation3], 1 }

</bundles_post_ra>
